<compile_context>
chip_gen: v5e
topology: v5e:2x2
jax: 0.10.0
libtpu: 0.0.40
codegen_flags: <defaults>
</compile_context>

<pallas_src>
import jax
import jax.numpy as jnp
from jax import lax
from jax.experimental import pallas as pl
from jax.experimental.pallas import tpu as pltpu


def _round_up(x: int, m: int) -> int:
    return -(-x // m) * m


def _sora_linear_kernel(x_ref, w_ref, b_ref, ag_ref, bl_ref, o_ref,
                        acc_ref, t_ref):
    """Grid = (M/tm, N/tn, K/tk); K (axis 2) is the reduction axis.

    x_ref  : [tm, tk]  input tile (original x dtype)
    w_ref  : [tn, tk]  base weight tile, stored as [N, K]
    b_ref  : [1,  tn]  bias tile
    ag_ref : [rp, tk]  (lora_A * lora_G) * scaling, r padded to rp (lane-dense)
    bl_ref : [tn, rp]  lora_B, padded
    o_ref  : [tm, tn]  output tile (resident across K)
    acc_ref: [tm, tn]  f32 scratch accumulator (base matmul)
    t_ref  : [tm, rp]  f32 scratch accumulator (rank-r projection; reused
                       across all j tiles of the current i)
    """
    j = pl.program_id(1)
    k = pl.program_id(2)

    @pl.when(k == 0)
    def _init_acc():
        acc_ref[...] = jnp.zeros_like(acc_ref)

    @pl.when(jnp.logical_and(j == 0, k == 0))
    def _init_t():
        t_ref[...] = jnp.zeros_like(t_ref)

    x = x_ref[...]

    # Base path: contract K of x against K of W ([N, K]) -> [tm, tn].
    acc_ref[...] += lax.dot_general(
        x, w_ref[...], (((1,), (1,)), ((), ())),
        preferred_element_type=jnp.float32)

    # LoRA rank-r projection: only depends on the row tile i, so compute it
    # once (j == 0) and reuse it for every output-column tile j of this i.
    # x is cast to the LoRA dtype, matching `x = x.to(lora_A.dtype)`.
    @pl.when(j == 0)
    def _project():
        t_ref[...] += lax.dot_general(
            x.astype(ag_ref.dtype), ag_ref[...], (((1,), (1,)), ((), ())),
            preferred_element_type=jnp.float32)

    # Epilogue: rank-r expansion once per (i, j) tile, add bias, cast, store.
    @pl.when(k == pl.num_programs(2) - 1)
    def _finalize():
        lora = lax.dot_general(
            t_ref[...], bl_ref[...].astype(jnp.float32),
            (((1,), (1,)), ((), ())),
            preferred_element_type=jnp.float32)
        out = acc_ref[...] + lora + b_ref[...].astype(jnp.float32)
        o_ref[...] = out.astype(o_ref.dtype)


def sora_linear(x, weight, bias, lora_A, lora_B, lora_G, scaling,
                *, tm=256, tn=256, tk=512):
    """x: [batch, seq, K]; weight: [N, K]; bias: [N];
    lora_A: [r, K]; lora_B: [N, r]; lora_G: [r, 1]; scaling: python float."""
    batch, seq, K = x.shape
    N = weight.shape[0]
    r = lora_A.shape[0]
    M = batch * seq
    out_dtype = x.dtype  # base_layer result dtype

    # Clamp tiles for small problems while keeping (8, 128) alignment.
    tm = min(tm, _round_up(M, 8))
    tn = min(tn, _round_up(N, 128))
    tk = min(tk, _round_up(K, 128))

    Mp = _round_up(M, tm)
    Np = _round_up(N, tn)
    Kp = _round_up(K, tk)
    rp = _round_up(r, 128)  # lane-dense rank

    # Pad operands with zeros (zero-padding does not change the math).
    x2d = jnp.pad(x.reshape(M, K), ((0, Mp - M), (0, Kp - K)))
    w = jnp.pad(weight, ((0, Np - N), (0, Kp - K)))            # stays [N, K]
    b2d = jnp.pad(bias, (0, Np - N)).reshape(1, Np)
    ag = ((lora_A * lora_G) * scaling).astype(lora_A.dtype)    # fold scaling
    ag = jnp.pad(ag, ((0, rp - r), (0, Kp - K)))               # [rp, Kp]
    bl = jnp.pad(lora_B, ((0, Np - N), (0, rp - r)))           # [Np, rp]

    grid = (Mp // tm, Np // tn, Kp // tk)

    flops = 2 * M * K * N + 2 * M * K * r + 2 * M * r * N
    bytes_accessed = sum(int(a.size) * a.dtype.itemsize
                         for a in (x2d, w, b2d, ag, bl)) \
        + Mp * Np * jnp.dtype(out_dtype).itemsize

    out2d = pl.pallas_call(
        _sora_linear_kernel,
        out_shape=jax.ShapeDtypeStruct((Mp, Np), out_dtype),
        grid_spec=pltpu.PrefetchScalarGridSpec(
            num_scalar_prefetch=0,
            grid=grid,
            in_specs=[
                pl.BlockSpec((tm, tk), lambda i, j, k: (i, k)),   # x
                pl.BlockSpec((tn, tk), lambda i, j, k: (j, k)),   # W [N, K]
                pl.BlockSpec((1, tn), lambda i, j, k: (0, j)),    # bias
                pl.BlockSpec((rp, tk), lambda i, j, k: (0, k)),   # (A*G)*scaling
                pl.BlockSpec((tn, rp), lambda i, j, k: (j, 0)),   # B
            ],
            out_specs=pl.BlockSpec((tm, tn), lambda i, j, k: (i, j)),
            scratch_shapes=[
                pltpu.VMEM((tm, tn), jnp.float32),   # base accumulator
                pltpu.VMEM((tm, rp), jnp.float32),   # rank-r accumulator
            ],
        ),
        compiler_params=pltpu.CompilerParams(
            # j and k must execute in grid order on each core: the rank-r
            # projection (computed at j==0) is reused by j>0 tiles.
            dimension_semantics=("parallel", "arbitrary", "arbitrary"),
            vmem_limit_bytes=64 * 1024 * 1024,
        ),
        cost_estimate=pl.CostEstimate(
            flops=flops, transcendentals=0, bytes_accessed=bytes_accessed),
    )(x2d, w, b2d, ag, bl)

    return out2d[:M, :N].reshape(batch, seq, N)


def _reference(x, weight, bias, lora_A, lora_B, lora_G, scaling):
    return (x @ weight.T + bias
            + (x @ (lora_A * lora_G).T) @ lora_B.T * scaling)


if __name__ == "__main__":
    key = jax.random.PRNGKey(0)

    def make_case(key, batch, seq, in_features, out_features, r, lora_alpha):
        scaling = float(lora_alpha) if lora_alpha > 0 else float(r)
        kx, kw, kb, ka, kbb, kg = jax.random.split(key, 6)
        x = jax.random.normal(kx, (batch, seq, in_features), dtype=jnp.float32)
        weight = jax.random.normal(kw, (out_features, in_features),
                                   dtype=jnp.float32) * 0.05
        bias = jax.random.normal(kb, (out_features,), dtype=jnp.float32) * 0.1
        # NOTE: with init_lora_weights=True, lora_B is zeros; nonzero synthetic
        # values are used so the LoRA path is actually exercised.
        lora_A = jax.random.normal(ka, (r, in_features), dtype=jnp.float32) * 0.05
        lora_B = jax.random.normal(kbb, (out_features, r), dtype=jnp.float32) * 0.05
        lora_G = jax.random.normal(kg, (r, 1), dtype=jnp.float32)
        return x, weight, bias, lora_A, lora_B, lora_G, scaling

    k1, k2 = jax.random.split(key)

    # Case 1: module-scale small shapes (grid collapses to a single tile).
    args1 = make_case(k1, batch=2, seq=8, in_features=32, out_features=64,
                      r=8, lora_alpha=2)
    out1 = jax.block_until_ready(sora_linear(*args1))
    ref1 = _reference(*args1)
    assert jnp.allclose(out1, ref1, atol=1e-3, rtol=1e-3), "case1 mismatch"

    # Case 2: small shapes with explicit small tiles -> multi-tile grid
    # (2 x 3 x 2), exercising the K reduction, the j==0 rank-r projection
    # and its reuse across j>0 tiles.
    args2 = make_case(k2, batch=2, seq=64, in_features=512, out_features=384,
                      r=16, lora_alpha=4)
    out2 = jax.block_until_ready(
        sora_linear(*args2, tm=64, tn=128, tk=256))
    ref2 = _reference(*args2)
    assert jnp.allclose(out2, ref2, atol=1e-3, rtol=1e-3), "case2 mismatch"

    print("KERNEL_OK")
</pallas_src>

<mosaic_0001>
module attributes {stable_mosaic.version = 11 : i64} {
  func.func @_sora_linear_kernel(%arg0: i32, %arg1: i32, %arg2: i32, %arg3: memref<16x128xf32, #tpu.memory_space<vmem>>, %arg4: memref<128x128xf32, #tpu.memory_space<vmem>>, %arg5: memref<1x128xf32, #tpu.memory_space<vmem>>, %arg6: memref<128x128xf32, #tpu.memory_space<vmem>>, %arg7: memref<128x128xf32, #tpu.memory_space<vmem>>, %arg8: memref<16x128xf32, #tpu.memory_space<vmem>>, %arg9: memref<16x128xf32, #tpu.memory_space<vmem>>, %arg10: memref<16x128xf32, #tpu.memory_space<vmem>>) attributes {dimension_semantics = [#tpu.dimension_semantics<parallel>, #tpu.dimension_semantics<arbitrary>, #tpu.dimension_semantics<arbitrary>], iteration_bounds = array<i64: 1, 1, 1>, scalar_prefetch = 0 : i64, scratch_operands = 2 : i64, tpu.core_type = #tpu.core_type<tc>, window_params = [{transform_indices = @transform_0, window_bounds = array<i64: 16, 128>}, {transform_indices = @transform_1, window_bounds = array<i64: 128, 128>}, {transform_indices = @transform_2, window_bounds = array<i64: 1, 128>}, {transform_indices = @transform_3, window_bounds = array<i64: 128, 128>}, {transform_indices = @transform_4, window_bounds = array<i64: 128, 128>}, {transform_indices = @transform_5, window_bounds = array<i64: 16, 128>}]} {
    %c0_i32 = arith.constant 0 : i32
    %0 = arith.cmpi eq, %arg2, %c0_i32 : i32
    %1 = arith.extui %0 : i1 to i32
    %c0_i32_0 = arith.constant 0 : i32
    %2 = arith.cmpi ne, %1, %c0_i32_0 : i32
    scf.if %2 {
      %cst_15 = arith.constant 0.000000e+00 : f32
      %20 = vector.broadcast %cst_15 : f32 to vector<16x128xf32>
      %c0_16 = arith.constant 0 : index
      %c0_17 = arith.constant 0 : index
      %21 = vector.load %arg9[%c0_16, %c0_17] : memref<16x128xf32, #tpu.memory_space<vmem>>, vector<16x128xf32>
      tpu.vector_store %arg9[%c0_16, %c0_17], %20 {strides = array<i32>} : memref<16x128xf32, #tpu.memory_space<vmem>>, vector<16x128xf32>,
    } else {
    }
    %c0_i32_1 = arith.constant 0 : i32
    %3 = arith.cmpi eq, %arg1, %c0_i32_1 : i32
    %c0_i32_2 = arith.constant 0 : i32
    %4 = arith.cmpi eq, %arg2, %c0_i32_2 : i32
    %5 = arith.andi %3, %4 : i1
    %6 = arith.extui %5 : i1 to i32
    %c0_i32_3 = arith.constant 0 : i32
    %7 = arith.cmpi ne, %6, %c0_i32_3 : i32
    scf.if %7 {
      %cst_15 = arith.constant 0.000000e+00 : f32
      %20 = vector.broadcast %cst_15 : f32 to vector<16x128xf32>
      %c0_16 = arith.constant 0 : index
      %c0_17 = arith.constant 0 : index
      %21 = vector.load %arg10[%c0_16, %c0_17] : memref<16x128xf32, #tpu.memory_space<vmem>>, vector<16x128xf32>
      tpu.vector_store %arg10[%c0_16, %c0_17], %20 {strides = array<i32>} : memref<16x128xf32, #tpu.memory_space<vmem>>, vector<16x128xf32>,
    } else {
    }
    %c0 = arith.constant 0 : index
    %c0_4 = arith.constant 0 : index
    %8 = vector.load %arg3[%c0, %c0_4] : memref<16x128xf32, #tpu.memory_space<vmem>>, vector<16x128xf32>
    %c0_5 = arith.constant 0 : index
    %c0_6 = arith.constant 0 : index
    %9 = vector.load %arg9[%c0_5, %c0_6] : memref<16x128xf32, #tpu.memory_space<vmem>>, vector<16x128xf32>
    %c0_7 = arith.constant 0 : index
    %c0_8 = arith.constant 0 : index
    %10 = vector.load %arg4[%c0_7, %c0_8] : memref<128x128xf32, #tpu.memory_space<vmem>>, vector<128x128xf32>
    %cst = arith.constant dense<0.000000e+00> : vector<16x128xf32>
    %11 = tpu.matmul %8, %10, %cst {dimension_numbers = #tpu.dot_dimension_numbers<[1], [1], [0], [0], [0, 0, 1, 0], [], []>} : vector<16x128xf32>, vector<128x128xf32>, vector<16x128xf32> -> vector<16x128xf32>
    %12 = arith.addf %9, %11 : vector<16x128xf32>
    %c0_9 = arith.constant 0 : index
    %c0_10 = arith.constant 0 : index
    %13 = vector.load %arg9[%c0_9, %c0_10] : memref<16x128xf32, #tpu.memory_space<vmem>>, vector<16x128xf32>
    tpu.vector_store %arg9[%c0_9, %c0_10], %12 {strides = array<i32>} : memref<16x128xf32, #tpu.memory_space<vmem>>, vector<16x128xf32>,
    %c0_i32_11 = arith.constant 0 : i32
    %14 = arith.cmpi eq, %arg1, %c0_i32_11 : i32
    %15 = arith.extui %14 : i1 to i32
    %c0_i32_12 = arith.constant 0 : i32
    %16 = arith.cmpi ne, %15, %c0_i32_12 : i32
    scf.if %16 {
      %c0_15 = arith.constant 0 : index
      %c0_16 = arith.constant 0 : index
      %20 = vector.load %arg10[%c0_15, %c0_16] : memref<16x128xf32, #tpu.memory_space<vmem>>, vector<16x128xf32>
      %c0_17 = arith.constant 0 : index
      %c0_18 = arith.constant 0 : index
      %21 = vector.load %arg6[%c0_17, %c0_18] : memref<128x128xf32, #tpu.memory_space<vmem>>, vector<128x128xf32>
      %cst_19 = arith.constant dense<0.000000e+00> : vector<16x128xf32>
      %22 = tpu.matmul %8, %21, %cst_19 {dimension_numbers = #tpu.dot_dimension_numbers<[1], [1], [0], [0], [0, 0, 1, 0], [], []>} : vector<16x128xf32>, vector<128x128xf32>, vector<16x128xf32> -> vector<16x128xf32>
      %23 = arith.addf %20, %22 : vector<16x128xf32>
      %c0_20 = arith.constant 0 : index
      %c0_21 = arith.constant 0 : index
      %24 = vector.load %arg10[%c0_20, %c0_21] : memref<16x128xf32, #tpu.memory_space<vmem>>, vector<16x128xf32>
      tpu.vector_store %arg10[%c0_20, %c0_21], %23 {strides = array<i32>} : memref<16x128xf32, #tpu.memory_space<vmem>>, vector<16x128xf32>,
    } else {
    }
    %c0_i32_13 = arith.constant 0 : i32
    %17 = arith.cmpi eq, %arg2, %c0_i32_13 : i32
    %18 = arith.extui %17 : i1 to i32
    %c0_i32_14 = arith.constant 0 : i32
    %19 = arith.cmpi ne, %18, %c0_i32_14 : i32
    scf.if %19 {
      %c0_15 = arith.constant 0 : index
      %c0_16 = arith.constant 0 : index
      %20 = vector.load %arg10[%c0_15, %c0_16] : memref<16x128xf32, #tpu.memory_space<vmem>>, vector<16x128xf32>
      %c0_17 = arith.constant 0 : index
      %c0_18 = arith.constant 0 : index
      %21 = vector.load %arg7[%c0_17, %c0_18] : memref<128x128xf32, #tpu.memory_space<vmem>>, vector<128x128xf32>
      %cst_19 = arith.constant dense<0.000000e+00> : vector<16x128xf32>
      %22 = tpu.matmul %20, %21, %cst_19 {dimension_numbers = #tpu.dot_dimension_numbers<[1], [1], [0], [0], [0, 0, 1, 0], [], []>} : vector<16x128xf32>, vector<128x128xf32>, vector<16x128xf32> -> vector<16x128xf32>
      %c0_20 = arith.constant 0 : index
      %c0_21 = arith.constant 0 : index
      %23 = vector.load %arg9[%c0_20, %c0_21] : memref<16x128xf32, #tpu.memory_space<vmem>>, vector<16x128xf32>
      %24 = arith.addf %23, %22 : vector<16x128xf32>
      %c0_22 = arith.constant 0 : index
      %c0_23 = arith.constant 0 : index
      %25 = vector.load %arg5[%c0_22, %c0_23] : memref<1x128xf32, #tpu.memory_space<vmem>>, vector<1x128xf32>
      %26 = vector.broadcast %25 : vector<1x128xf32> to vector<16x128xf32>
      %27 = arith.addf %24, %26 : vector<16x128xf32>
      %c0_24 = arith.constant 0 : index
      %c0_25 = arith.constant 0 : index
      %28 = vector.load %arg8[%c0_24, %c0_25] : memref<16x128xf32, #tpu.memory_space<vmem>>, vector<16x128xf32>
      tpu.vector_store %arg8[%c0_24, %c0_25], %27 {strides = array<i32>} : memref<16x128xf32, #tpu.memory_space<vmem>>, vector<16x128xf32>,
    } else {
    }
    return
  }
  func.func @transform_0(%arg0: i32, %arg1: i32, %arg2: i32) -> (i32, i32) {
    %c0_i32 = arith.constant 0 : i32
    return %arg0, %arg2 : i32, i32
  }
  func.func @transform_1(%arg0: i32, %arg1: i32, %arg2: i32) -> (i32, i32) {
    %c0_i32 = arith.constant 0 : i32
    return %arg1, %arg2 : i32, i32
  }
  func.func @transform_2(%arg0: i32, %arg1: i32, %arg2: i32) -> (i32, i32) {
    %c0_i32 = arith.constant 0 : i32
    %c0_i32_0 = arith.constant 0 : i32
    return %c0_i32, %arg1 : i32, i32
  }
  func.func @transform_3(%arg0: i32, %arg1: i32, %arg2: i32) -> (i32, i32) {
    %c0_i32 = arith.constant 0 : i32
    %c0_i32_0 = arith.constant 0 : i32
    return %c0_i32, %arg2 : i32, i32
  }
  func.func @transform_4(%arg0: i32, %arg1: i32, %arg2: i32) -> (i32, i32) {
    %c0_i32 = arith.constant 0 : i32
    %c0_i32_0 = arith.constant 0 : i32
    return %arg1, %c0_i32 : i32, i32
  }
  func.func @transform_5(%arg0: i32, %arg1: i32, %arg2: i32) -> (i32, i32) {
    %c0_i32 = arith.constant 0 : i32
    return %arg0, %arg1 : i32, i32
  }
}

</mosaic_0001>

<bundles_post_ra>
// kernel: tpu_custom_call.1
= control target key start
LH: loop header
LB: loop body
LE: loop exit
PB: predicated region body
PF: predicated region fallthrough
CT: control target
= control target key end

     0   :  { %10 = vsyncpa [#allocation5], 0  ;;  %s491_s0 = inlined_call_operand.hbm [shape: f32[16,128], index: 0, kind: input, shape index: {}]   ;;  %s492_s1 = inlined_call_operand.hbm [shape: f32[128,128], index: 1, kind: input, shape index: {}]   ;;  %s493_s2 = inlined_call_operand.vmem [shape: f32[1,128], index: 2, kind: input, shape index: {}]   ;;  %s494_s3 = inlined_call_operand.hbm [shape: f32[128,128], index: 3, kind: input, shape index: {}]   ;;  %s495_s4 = inlined_call_operand.hbm [shape: f32[128,128], index: 4, kind: input, shape index: {}]   ;;  %s496_s5 = inlined_call_operand.hbm [shape: f32[16,128], index: 5, kind: output, shape index: {}]  }
   0x1   :  { %11 = vsyncpa [#allocation8], 0 }
   0x2   :  { %12 = vsyncpa [#allocation11], 0 }
   0x3   :  { %13 = vsyncpa [#allocation6], 0  ;;  %s31_s20 = sshll.u32 %s492_s1, 4  ;;  %s421_s21 = smov [#allocation7]   ;;  %s32_s20 = int_to_ptr.hbm [resolvable:$true] %s31_s20 }
   0x4   :  { %s33_s22 = sshll.u32 %s421_s21, 4  ;;  %s18_s25 = sshll.u32 %s491_s0, 4  ;;  %s34_s22 = int_to_ptr.vmem [resolvable:$true] %s33_s22  ;;  %s19_s25 = int_to_ptr.hbm [resolvable:$true] %s18_s25 }
   0x5   :  { %s422_s26 = smov 128   ;;  %s423_s27 = smov 8  }
   0x6   :  { %39 = dma.hbm_to_vmem [thread:$0]  %s32_s20, 2048, %s34_s22, [#allocation8], %s422_s26, %s422_s26, %s423_s27  }
   0x7   :  { %s424_s28 = smov [#allocation4]   ;;  %s46_s1 = sshll.u32 %s494_s3, 4  ;;  %s47_s1 = int_to_ptr.hbm [resolvable:$true] %s46_s1 }
   0x8   :  { %s20_s29 = sshll.u32 %s424_s28, 4  ;;  %s59_s8 = sshll.u32 %s495_s4, 4  ;;  %s21_s29 = int_to_ptr.vmem [resolvable:$true] %s20_s29  ;;  %s60_s8 = int_to_ptr.hbm [resolvable:$true] %s59_s8 }
   0x9   :  { %26 = dma.hbm_to_vmem [thread:$0]  %s19_s25, 256, %s21_s29, [#allocation5], %s422_s26, %s422_s26, %s423_s27  }
   0xa   :  { %s425_s9 = smov [#allocation9]   ;;  %s426_s11 = smov [#allocation10]  }
   0xb   :  { %s48_s10 = sshll.u32 %s425_s9, 4  ;;  %s61_s3 = sshll.u32 %s426_s11, 4  ;;  %s49_s10 = int_to_ptr.vmem [resolvable:$true] %s48_s10  ;;  %s62_s3 = int_to_ptr.vmem [resolvable:$true] %s61_s3 }
   0xc   :  { %54 = dma.hbm_to_vmem [thread:$0]  %s47_s1, 2048, %s49_s10, [#allocation8], %s422_s26, %s422_s26, %s423_s27  }
   0xd   :  { %67 = dma.hbm_to_vmem [thread:$0]  %s60_s8, 2048, %s62_s3, [#allocation11], %s422_s26, %s422_s26, %s423_s27  }
   0xe   :  { %413 = dma.done.wait [#allocation5], 256  }
   0xf   :  { %414 = vsyncadd [#allocation5], 4294967040 }
  0x10   :  { %415 = dma.done.wait [#allocation8], 4096  }
  0x11   :  { %416 = vsyncadd [#allocation8], 4294963200 }
  0x12   :  { %417 = dma.done.wait [#allocation11], 2048  }
  0x13   :  { %418 = vsyncadd [#allocation11], 4294965248  ;;  %v164_v0 = vld [vmem:[#allocation9 + $0x78] sm:$0xff]  ;;  %v163_v1 = vld [vmem:[#allocation9 + $0x70] sm:$0xff]  ;;  %s427_s13 = smov [#allocation12]   ;;  %s254_s17 = sshll.u32 %s496_s5, 4  ;;  %s255_s17 = int_to_ptr.hbm [resolvable:$true] %s254_s17 }
  0x14   :  { %165 = vmatpush.xpose.msra.mxu1 %v164_v0  ;;  %v162_v2 = vld [vmem:[#allocation9 + $0x68] sm:$0xff]  ;;  %v161_v3 = vld [vmem:[#allocation9 + $0x60] sm:$0xff]  ;;  %v160_v4 = vld [vmem:[#allocation9 + $0x58] sm:$0xff]  ;;  %s252_s14 = sshll.u32 %s427_s13, 4  ;;  %s253_s14 = int_to_ptr.vmem [resolvable:$true] %s252_s14 }
  0x15   :  { %v159_v5 = vld [vmem:[#allocation9 + $0x50] sm:$0xff]  ;;  %v158_v6 = vld [vmem:[#allocation9 + $0x48] sm:$0xff]  ;;  %v157_v7 = vld [vmem:[#allocation9 + $0x40] sm:$0xff] }
  0x16   :  { %v156_v8 = vld [vmem:[#allocation9 + $0x38] sm:$0xff]  ;;  %v155_v9 = vld [vmem:[#allocation9 + $0x30] sm:$0xff]  ;;  %v154_v10 = vld [vmem:[#allocation9 + $0x28] sm:$0xff] }
  0x17   :  { %v212_v11 = vld [vmem:[#allocation10 + $0x78] sm:$0xff]  ;;  %v153_v13 = vld [vmem:[#allocation9 + $0x20] sm:$0xff]  ;;  %v211_v14 = vld [vmem:[#allocation10 + $0x70] sm:$0xff] }
  0x18   :  { %166 = vmatpush.xpose.msra.mxu1 %v163_v1  ;;  %v116_v12 = vld [vmem:[#allocation7 + $0x78] sm:$0xff]  ;;  %213 = vmatpush.xpose.msra.mxu2 %v212_v11  ;;  %v115_v15 = vld [vmem:[#allocation7 + $0x70] sm:$0xff]  ;;  %v210_v17 = vld [vmem:[#allocation10 + $0x68] sm:$0xff] }
  0x19   :  { %117 = vmatpush.xpose.msra.mxu0 %v116_v12  ;;  %269 = vmatpush.xpose.msra.mxu3 %v116_v12  ;;  %v152_v16 = vld [vmem:[#allocation9 + $0x18] sm:$0xff]  ;;  %v114_v18 = vld [vmem:[#allocation7 + $0x68] sm:$0xff]  ;;  %v151_v19 = vld [vmem:[#allocation9 + $0x10] sm:$0xff] }
  0x1a   :  { %v209_v20 = vld [vmem:[#allocation10 + $0x60] sm:$0xff]  ;;  %v150_v22 = vld [vmem:[#allocation9 + $0x8] sm:$0xff]  ;;  %v208_v23 = vld [vmem:[#allocation10 + $0x58] sm:$0xff] }
  0x1b   :  { %v113_v21 = vld [vmem:[#allocation7 + $0x60] sm:$0xff]  ;;  %v112_v24 = vld [vmem:[#allocation7 + $0x58] sm:$0xff]  ;;  %v207_v26 = vld [vmem:[#allocation10 + $0x50] sm:$0xff] }
  0x1c   :  { %167 = vmatpush.xpose.msra.mxu1 %v162_v2  ;;  %214 = vmatpush.xpose.msra.mxu2 %v211_v14  ;;  %v149_v25 = vld [vmem:[#allocation9] sm:$0xff]  ;;  %v111_v27 = vld [vmem:[#allocation7 + $0x50] sm:$0xff]  ;;  %v206_v29 = vld [vmem:[#allocation10 + $0x48] sm:$0xff] }
  0x1d   :  { %118 = vmatpush.xpose.msra.mxu0 %v115_v15  ;;  %270 = vmatpush.xpose.msra.mxu3 %v115_v15  ;;  %v97_v28 = vld [vmem:[#allocation4] sm:$0xff]  ;;  %v110_v30 = vld [vmem:[#allocation7 + $0x48] sm:$0xff]  ;;  %v205_v31 = vld [vmem:[#allocation10 + $0x40] sm:$0xff] }
  0x1e   :  { %v109_v32 = vld [vmem:[#allocation7 + $0x40] sm:$0xff]  ;;  %v98_v33 = vld [vmem:[#allocation4 + $0x8] sm:$0xff]  ;;  %v203_v36 = vld [vmem:[#allocation10 + $0x30] sm:$0xff] }
  0x1f   :  { %v204_v34 = vld [vmem:[#allocation10 + $0x38] sm:$0xff]  ;;  %v107_v37 = vld [vmem:[#allocation7 + $0x30] sm:$0xff]  ;;  %v202_v38 = vld [vmem:[#allocation10 + $0x28] sm:$0xff] }
  0x20   :  { %168 = vmatpush.xpose.msra.mxu1 %v161_v3  ;;  %215 = vmatpush.xpose.msra.mxu2 %v210_v17  ;;  %v108_v35 = vld [vmem:[#allocation7 + $0x38] sm:$0xff]  ;;  %v106_v39 = vld [vmem:[#allocation7 + $0x28] sm:$0xff]  ;;  %v201_v40 = vld [vmem:[#allocation10 + $0x20] sm:$0xff] }
  0x21   :  { %119 = vmatpush.xpose.msra.mxu0 %v114_v18  ;;  %271 = vmatpush.xpose.msra.mxu3 %v114_v18  ;;  %v105_v41 = vld [vmem:[#allocation7 + $0x20] sm:$0xff]  ;;  %v200_v42 = vld [vmem:[#allocation10 + $0x18] sm:$0xff]  ;;  %v199_v44 = vld [vmem:[#allocation10 + $0x10] sm:$0xff] }
  0x22   :  { %v104_v43 = vld [vmem:[#allocation7 + $0x18] sm:$0xff]  ;;  %v103_v45 = vld [vmem:[#allocation7 + $0x10] sm:$0xff]  ;;  %v198_v46 = vld [vmem:[#allocation10 + $0x8] sm:$0xff] }
  0x23   :  { %v102_v47 = vld [vmem:[#allocation7 + $0x8] sm:$0xff]  ;;  %v197_v48 = vld [vmem:[#allocation10] sm:$0xff]  ;;  %v292_v53 = vld [vmem:[%s493_s2] ss:$0 sm:$0xff] }
  0x24   :  { %169 = vmatpush.xpose.msra.mxu1 %v160_v4  ;;  %216 = vmatpush.xpose.msra.mxu2 %v209_v20  ;;  %v101_v49 = vld [vmem:[#allocation7] sm:$0xff] }
  0x25   :  { %120 = vmatpush.xpose.msra.mxu0 %v113_v21  ;;  %272 = vmatpush.xpose.msra.mxu3 %v113_v21 }
  0x28   :  { %170 = vmatpush.xpose.msra.mxu1 %v159_v5  ;;  %217 = vmatpush.xpose.msra.mxu2 %v208_v23 }
  0x29   :  { %121 = vmatpush.xpose.msra.mxu0 %v112_v24  ;;  %273 = vmatpush.xpose.msra.mxu3 %v112_v24 }
  0x2c   :  { %171 = vmatpush.xpose.msra.mxu1 %v158_v6  ;;  %218 = vmatpush.xpose.msra.mxu2 %v207_v26 }
  0x2d   :  { %122 = vmatpush.xpose.msra.mxu0 %v111_v27  ;;  %274 = vmatpush.xpose.msra.mxu3 %v111_v27 }
  0x30   :  { %172 = vmatpush.xpose.msra.mxu1 %v157_v7  ;;  %219 = vmatpush.xpose.msra.mxu2 %v206_v29 }
  0x31   :  { %123 = vmatpush.xpose.msra.mxu0 %v110_v30  ;;  %275 = vmatpush.xpose.msra.mxu3 %v110_v30 }
  0x34   :  { %173 = vmatpush.xpose.msra.mxu1 %v156_v8  ;;  %220 = vmatpush.xpose.msra.mxu2 %v205_v31 }
  0x35   :  { %124 = vmatpush.xpose.msra.mxu0 %v109_v32  ;;  %276 = vmatpush.xpose.msra.mxu3 %v109_v32 }
  0x38   :  { %174 = vmatpush.xpose.msra.mxu1 %v155_v9  ;;  %221 = vmatpush.xpose.msra.mxu2 %v204_v34 }
  0x39   :  { %125 = vmatpush.xpose.msra.mxu0 %v108_v35  ;;  %277 = vmatpush.xpose.msra.mxu3 %v108_v35 }
  0x3c   :  { %175 = vmatpush.xpose.msra.mxu1 %v154_v10  ;;  %222 = vmatpush.xpose.msra.mxu2 %v203_v36 }
  0x3d   :  { %126 = vmatpush.xpose.msra.mxu0 %v107_v37  ;;  %278 = vmatpush.xpose.msra.mxu3 %v107_v37 }
  0x40   :  { %176 = vmatpush.xpose.msra.mxu1 %v153_v13  ;;  %223 = vmatpush.xpose.msra.mxu2 %v202_v38 }
  0x41   :  { %127 = vmatpush.xpose.msra.mxu0 %v106_v39  ;;  %279 = vmatpush.xpose.msra.mxu3 %v106_v39 }
  0x44   :  { %177 = vmatpush.xpose.msra.mxu1 %v152_v16  ;;  %224 = vmatpush.xpose.msra.mxu2 %v201_v40 }
  0x45   :  { %128 = vmatpush.xpose.msra.mxu0 %v105_v41  ;;  %280 = vmatpush.xpose.msra.mxu3 %v105_v41 }
  0x48   :  { %178 = vmatpush.xpose.msra.mxu1 %v151_v19  ;;  %225 = vmatpush.xpose.msra.mxu2 %v200_v42 }
  0x49   :  { %129 = vmatpush.xpose.msra.mxu0 %v104_v43  ;;  %281 = vmatpush.xpose.msra.mxu3 %v104_v43 }
  0x4c   :  { %179 = vmatpush.xpose.msra.mxu1 %v150_v22  ;;  %226 = vmatpush.xpose.msra.mxu2 %v199_v44 }
  0x4d   :  { %130 = vmatpush.xpose.msra.mxu0 %v103_v45  ;;  %282 = vmatpush.xpose.msra.mxu3 %v103_v45 }
  0x50   :  { %180 = vmatpush.xpose.msra.mxu1 %v149_v25  ;;  %227 = vmatpush.xpose.msra.mxu2 %v198_v46 }
  0x51   :  { %131 = vmatpush.xpose.msra.mxu0 %v102_v47  ;;  %283 = vmatpush.xpose.msra.mxu3 %v102_v47 }
  0x53   :  { %181 = vmatmul.f32.vlgmr.msra.gmra.mxu1 %v97_v28 }
  0x54   :  { %228 = vmatpush.xpose.msra.mxu2 %v197_v48 }
  0x55   :  { %132 = vmatpush.xpose.msra.mxu0 %v101_v49  ;;  %284 = vmatpush.xpose.msra.mxu3 %v101_v49 }
  0x58   :  { %133 = vmatmul.f32.vlgmr.msra.gmra.mxu0 %v97_v28  ;;  %136 = vmatmul.f32.vlgmr.msra.gmra.mxu3 %v98_v33 }
  0x5b   :  { %184 = vmatmul.f32.gmra.mxu1 %v98_v33 }
  0xd0   :  { %v182_v50 = vpop.f32.mrf.mxu1 }
  0xd1   :  { %229 = vmatmul.f32.vlgmr.msra.gmra.mxu2 %v182_v50 }
  0xd5   :  { %v134_v52 = vpop.f32.mrf.mxu0 }
  0xd8   :  { %v185_v51 = vpop.f32.mrf.mxu1 }
  0xd9   :  { %232 = vmatmul.f32.gmra.mxu2 %v185_v51 }
  0xdb   :  { %v137_v57 = vpop.f32.mrf.mxu3 }
 0x154   :  { %v230_v54 = vpop.f32.mrf.mxu2 }
 0x155   :  { %v238_v55 = vadd.f32 %v230_v54, %v134_v52 }
 0x157   :  { %v244_v56 = vadd.f32 %v292_v53, %v238_v55 }
 0x159   :  { %246 = vst [vmem:[#allocation12] sm:$0xff] %v244_v56 }
 0x15c   :  { %v233_v58 = vpop.f32.mrf.mxu2 }
 0x15d   :  { %v239_v59 = vadd.f32 %v233_v58, %v137_v57 }
 0x15f   :  { %v245_v60 = vadd.f32 %v292_v53, %v239_v59 }
 0x161   :  { %247 = vst [vmem:[#allocation12 + $0x8] sm:$0xff] %v245_v60 }
 0x162   :  { %260 = dma.vmem_to_hbm [thread:$0]  %s253_s14, 256, %s255_s17, [#allocation6], %s422_s26, %s422_s26, %s423_s27  }
 0x163   :  { %419 = dma.done.wait [#allocation6], 256  }
 0x164   :  { %420 = vsyncadd [#allocation6], 4294967040 }
 0x165   :  { %265 = vsyncpa [#allocation5], 1 }
 0x166   :  { %266 = vsyncpa [#allocation8], 1 }
 0x167   :  { %267 = vsyncpa [#allocation11], 1 }
 0x168   :  { %268 = vsyncpa [#allocation6], 1 }

</bundles_post_ra>
